<compile_context>
chip_gen: v7x
topology: tpu7x:2x2x1
jax: 0.10.0
libtpu: 0.0.40
codegen_flags: <defaults>
</compile_context>

<pallas_src>
import functools
import math

import jax
import jax.numpy as jnp
from jax.experimental import pallas as pl
from jax.experimental.pallas import tpu as pltpu


def _spatial_attention_kernel(w_ref, x_ref, o_ref,
                              sum_ref, max_ref, avg_pad_ref, max_pad_ref,
                              *, C, H, W):
    # w_ref       : SMEM (18,)        conv weight (1,2,3,3) flat [in_ch,ky,kx]
    # x_ref       : VMEM (1, Ct, H, W) one channel-chunk of one batch element
    # o_ref       : VMEM (1, 1, H, W)  attention map (written at last chunk)
    # sum_ref     : VMEM (H, W) f32    running channel sum
    # max_ref     : VMEM (H, W) f32    running channel max
    # avg/max_pad : VMEM (H+2, W+2)    zero-padded maps for the SAME conv
    c_idx = pl.program_id(1)
    num_c = pl.num_programs(1)
    Ct = x_ref.shape[1]

    @pl.when(c_idx == 0)
    def _init():
        sum_ref[...] = jnp.zeros((H, W), jnp.float32)
        max_ref[...] = jnp.full((H, W), -jnp.inf, jnp.float32)

    # ---- Fused running channel sum + max: single traversal of the chunk ----
    def body(i, carry):
        s, m = carry
        xi = x_ref[0, i].astype(jnp.float32)
        if C % Ct != 0:
            # Mask garbage channels in the (out-of-bounds) tail chunk.
            valid = (c_idx * Ct + i) < C
            s = jnp.where(valid, s + xi, s)
            m = jnp.where(valid, jnp.maximum(m, xi), m)
        else:
            s = s + xi
            m = jnp.maximum(m, xi)
        return s, m

    s, m = jax.lax.fori_loop(0, Ct, body, (sum_ref[...], max_ref[...]),
                             unroll=min(Ct, 8))
    sum_ref[...] = s
    max_ref[...] = m

    # ---- Finalize: 3x3 SAME conv over [avg, max] + sigmoid ----
    @pl.when(c_idx == num_c - 1)
    def _finalize():
        # Hoist all 18 scalar weight reads out of the tap loops.
        w_avg = [[w_ref[0 * 9 + ky * 3 + kx] for kx in range(3)]
                 for ky in range(3)]
        w_max = [[w_ref[1 * 9 + ky * 3 + kx] for kx in range(3)]
                 for ky in range(3)]

        # Zero-padded maps: SAME border handled here (no wrapper-side pad).
        avg_pad_ref[...] = jnp.zeros((H + 2, W + 2), jnp.float32)
        max_pad_ref[...] = jnp.zeros((H + 2, W + 2), jnp.float32)
        avg_pad_ref[1:H + 1, 1:W + 1] = sum_ref[...] * (1.0 / C)
        max_pad_ref[1:H + 1, 1:W + 1] = max_ref[...]
        avg_p = avg_pad_ref[...]          # (H+2, W+2)
        max_p = max_pad_ref[...]

        # 3 lane-offset slices per map (kx); only sublane (ky) offsets inside
        # the tap loop; both input channels combined before the ky shift;
        # one independent accumulator per kx.
        accs = []
        for kx in range(3):
            a_kx = avg_p[:, kx:kx + W]    # (H+2, W)
            m_kx = max_p[:, kx:kx + W]
            acc = None
            for ky in range(3):
                t = w_avg[ky][kx] * a_kx + w_max[ky][kx] * m_kx
                t = t[ky:ky + H, :]       # sublane offset only
                acc = t if acc is None else acc + t
            accs.append(acc)
        conv = (accs[0] + accs[1]) + accs[2]
        o_ref[0, 0] = jax.nn.sigmoid(conv).astype(o_ref.dtype)


def _pick_c_tile(C, H, W, budget_bytes=2 << 20):
    """Channel-chunk size that keeps the double-buffered x block small."""
    per_channel = H * W * 4            # f32 slab per channel in VMEM
    return int(max(1, min(C, budget_bytes // max(per_channel, 1))))


def spatial_attention(x, weight, *, c_tile=None):
    """x: (N, C, H, W).  weight: (1, 2, 3, 3) conv weight, no bias."""
    N, C, H, W = x.shape
    if c_tile is None:
        c_tile = _pick_c_tile(C, H, W)
    num_c = pl.cdiv(C, c_tile)
    w_flat = weight.reshape(-1).astype(jnp.float32)      # (18,)

    kernel = functools.partial(_spatial_attention_kernel, C=C, H=H, W=W)
    itemsize = jnp.dtype(x.dtype).itemsize
    cost = pl.CostEstimate(
        flops=N * H * W * (2 * C + 36),
        transcendentals=N * H * W,
        bytes_accessed=N * C * H * W * itemsize + N * H * W * itemsize,
    )
    return pl.pallas_call(
        kernel,
        out_shape=jax.ShapeDtypeStruct((N, 1, H, W), x.dtype),
        grid=(N, num_c),
        in_specs=[
            pl.BlockSpec(memory_space=pltpu.MemorySpace.SMEM),        # weights
            pl.BlockSpec((1, c_tile, H, W), lambda b, c: (b, c, 0, 0)),
        ],
        out_specs=pl.BlockSpec((1, 1, H, W), lambda b, c: (b, 0, 0, 0)),
        scratch_shapes=[
            pltpu.VMEM((H, W), jnp.float32),            # running sum
            pltpu.VMEM((H, W), jnp.float32),            # running max
            pltpu.VMEM((H + 2, W + 2), jnp.float32),    # padded avg map
            pltpu.VMEM((H + 2, W + 2), jnp.float32),    # padded max map
        ],
        compiler_params=pltpu.CompilerParams(
            dimension_semantics=("parallel", "arbitrary")),
        cost_estimate=cost,
    )(w_flat, x)


def _reference(x, weight):
    avg = jnp.mean(x, axis=1, keepdims=True)
    mx = jnp.max(x, axis=1, keepdims=True)
    cat = jnp.concatenate([avg, mx], axis=1)
    conv = jax.lax.conv_general_dilated(
        cat, weight, window_strides=(1, 1), padding="SAME",
        dimension_numbers=("NCHW", "OIHW", "NCHW"))
    return jax.nn.sigmoid(conv)


if __name__ == "__main__":
    key = jax.random.PRNGKey(0)
    k_w, k_x = jax.random.split(key)

    N, C, H, W = 2, 4, 16, 16
    # Deterministic conv weight init (PyTorch-style uniform, fan_in = 2*3*3).
    bound = 1.0 / math.sqrt(2 * 3 * 3)
    weight = jax.random.uniform(k_w, (1, 2, 3, 3), jnp.float32, -bound, bound)
    x = jax.random.normal(k_x, (N, C, H, W), jnp.float32)

    out = jax.block_until_ready(spatial_attention(x, weight))
    ref = jax.block_until_ready(_reference(x, weight))

    assert out.shape == (N, 1, H, W), out.shape
    err = float(jnp.max(jnp.abs(out - ref)))
    assert jnp.allclose(out, ref, atol=1e-5, rtol=1e-5), err
    print("KERNEL_OK")
</pallas_src>

<mosaic_0001>
module attributes {stable_mosaic.version = 11 : i64} {
  func.func @_spatial_attention_kernel(%arg0: i32, %arg1: i32, %arg2: memref<18xf32, #tpu.memory_space<smem>>, %arg3: memref<1x4x16x16xf32, #tpu.memory_space<vmem>>, %arg4: memref<1x1x16x16xf32, #tpu.memory_space<vmem>>, %arg5: memref<16x16xf32, #tpu.memory_space<vmem>>, %arg6: memref<16x16xf32, #tpu.memory_space<vmem>>, %arg7: memref<18x18xf32, #tpu.memory_space<vmem>>, %arg8: memref<18x18xf32, #tpu.memory_space<vmem>>) attributes {dimension_semantics = [#tpu.dimension_semantics<parallel>, #tpu.dimension_semantics<arbitrary>], iteration_bounds = array<i64: 2, 1>, scalar_prefetch = 0 : i64, scratch_operands = 4 : i64, tpu.core_type = #tpu.core_type<tc>, window_params = [{transform_indices = @transform_0, window_bounds = array<i64: 18>}, {transform_indices = @transform_1, window_bounds = array<i64: 1, 4, 16, 16>}, {transform_indices = @transform_2, window_bounds = array<i64: 1, 1, 16, 16>}]} {
    %c0_i32 = arith.constant 0 : i32
    %0 = arith.cmpi eq, %arg1, %c0_i32 : i32
    %1 = arith.extui %0 : i1 to i32
    %c0_i32_0 = arith.constant 0 : i32
    %2 = arith.cmpi ne, %1, %c0_i32_0 : i32
    scf.if %2 {
      %cst = arith.constant 0.000000e+00 : f32
      %30 = vector.broadcast %cst : f32 to vector<16x16xf32>
      %c0_23 = arith.constant 0 : index
      %c0_24 = arith.constant 0 : index
      %31 = vector.load %arg5[%c0_23, %c0_24] : memref<16x16xf32, #tpu.memory_space<vmem>>, vector<16x16xf32>
      tpu.vector_store %arg5[%c0_23, %c0_24], %30 {strides = array<i32>} : memref<16x16xf32, #tpu.memory_space<vmem>>, vector<16x16xf32>,
      %cst_25 = arith.constant 0xFF800000 : f32
      %32 = vector.broadcast %cst_25 : f32 to vector<16x16xf32>
      %c0_26 = arith.constant 0 : index
      %c0_27 = arith.constant 0 : index
      %33 = vector.load %arg6[%c0_26, %c0_27] : memref<16x16xf32, #tpu.memory_space<vmem>>, vector<16x16xf32>
      tpu.vector_store %arg6[%c0_26, %c0_27], %32 {strides = array<i32>} : memref<16x16xf32, #tpu.memory_space<vmem>>, vector<16x16xf32>,
    } else {
    }
    %c0 = arith.constant 0 : index
    %c0_1 = arith.constant 0 : index
    %3 = vector.load %arg5[%c0, %c0_1] : memref<16x16xf32, #tpu.memory_space<vmem>>, vector<16x16xf32>
    %c0_2 = arith.constant 0 : index
    %c0_3 = arith.constant 0 : index
    %4 = vector.load %arg6[%c0_2, %c0_3] : memref<16x16xf32, #tpu.memory_space<vmem>>, vector<16x16xf32>
    %c0_i32_4 = arith.constant 0 : i32
    %c0_5 = arith.constant 0 : index
    %5 = arith.index_cast %c0_i32_4 : i32 to index
    %c0_6 = arith.constant 0 : index
    %c0_7 = arith.constant 0 : index
    %6 = vector.load %arg3[%c0_5, %5, %c0_6, %c0_7] : memref<1x4x16x16xf32, #tpu.memory_space<vmem>>, vector<1x1x16x16xf32>
    %7 = vector.shape_cast %6 : vector<1x1x16x16xf32> to vector<16x16xf32>
    %8 = arith.addf %3, %7 : vector<16x16xf32>
    %9 = arith.maximumf %4, %7 : vector<16x16xf32>
    %c1_i32 = arith.constant 1 : i32
    %c0_8 = arith.constant 0 : index
    %10 = arith.index_cast %c1_i32 : i32 to index
    %c0_9 = arith.constant 0 : index
    %c0_10 = arith.constant 0 : index
    %11 = vector.load %arg3[%c0_8, %10, %c0_9, %c0_10] : memref<1x4x16x16xf32, #tpu.memory_space<vmem>>, vector<1x1x16x16xf32>
    %12 = vector.shape_cast %11 : vector<1x1x16x16xf32> to vector<16x16xf32>
    %13 = arith.addf %8, %12 : vector<16x16xf32>
    %14 = arith.maximumf %9, %12 : vector<16x16xf32>
    %c2_i32 = arith.constant 2 : i32
    %c0_11 = arith.constant 0 : index
    %15 = arith.index_cast %c2_i32 : i32 to index
    %c0_12 = arith.constant 0 : index
    %c0_13 = arith.constant 0 : index
    %16 = vector.load %arg3[%c0_11, %15, %c0_12, %c0_13] : memref<1x4x16x16xf32, #tpu.memory_space<vmem>>, vector<1x1x16x16xf32>
    %17 = vector.shape_cast %16 : vector<1x1x16x16xf32> to vector<16x16xf32>
    %18 = arith.addf %13, %17 : vector<16x16xf32>
    %19 = arith.maximumf %14, %17 : vector<16x16xf32>
    %c3_i32 = arith.constant 3 : i32
    %c0_14 = arith.constant 0 : index
    %20 = arith.index_cast %c3_i32 : i32 to index
    %c0_15 = arith.constant 0 : index
    %c0_16 = arith.constant 0 : index
    %21 = vector.load %arg3[%c0_14, %20, %c0_15, %c0_16] : memref<1x4x16x16xf32, #tpu.memory_space<vmem>>, vector<1x1x16x16xf32>
    %22 = vector.shape_cast %21 : vector<1x1x16x16xf32> to vector<16x16xf32>
    %23 = arith.addf %18, %22 : vector<16x16xf32>
    %24 = arith.maximumf %19, %22 : vector<16x16xf32>
    %c4_i32 = arith.constant 4 : i32
    %c0_17 = arith.constant 0 : index
    %c0_18 = arith.constant 0 : index
    %25 = vector.load %arg5[%c0_17, %c0_18] : memref<16x16xf32, #tpu.memory_space<vmem>>, vector<16x16xf32>
    tpu.vector_store %arg5[%c0_17, %c0_18], %23 {strides = array<i32>} : memref<16x16xf32, #tpu.memory_space<vmem>>, vector<16x16xf32>,
    %c0_19 = arith.constant 0 : index
    %c0_20 = arith.constant 0 : index
    %26 = vector.load %arg6[%c0_19, %c0_20] : memref<16x16xf32, #tpu.memory_space<vmem>>, vector<16x16xf32>
    tpu.vector_store %arg6[%c0_19, %c0_20], %24 {strides = array<i32>} : memref<16x16xf32, #tpu.memory_space<vmem>>, vector<16x16xf32>,
    %c0_i32_21 = arith.constant 0 : i32
    %27 = arith.cmpi eq, %arg1, %c0_i32_21 : i32
    %28 = arith.extui %27 : i1 to i32
    %c0_i32_22 = arith.constant 0 : i32
    %29 = arith.cmpi ne, %28, %c0_i32_22 : i32
    scf.if %29 {
      %c0_23 = arith.constant 0 : index
      %30 = memref.load %arg2[%c0_23] : memref<18xf32, #tpu.memory_space<smem>>
      %c1 = arith.constant 1 : index
      %31 = memref.load %arg2[%c1] : memref<18xf32, #tpu.memory_space<smem>>
      %c2 = arith.constant 2 : index
      %32 = memref.load %arg2[%c2] : memref<18xf32, #tpu.memory_space<smem>>
      %c3 = arith.constant 3 : index
      %33 = memref.load %arg2[%c3] : memref<18xf32, #tpu.memory_space<smem>>
      %c4 = arith.constant 4 : index
      %34 = memref.load %arg2[%c4] : memref<18xf32, #tpu.memory_space<smem>>
      %c5 = arith.constant 5 : index
      %35 = memref.load %arg2[%c5] : memref<18xf32, #tpu.memory_space<smem>>
      %c6 = arith.constant 6 : index
      %36 = memref.load %arg2[%c6] : memref<18xf32, #tpu.memory_space<smem>>
      %c7 = arith.constant 7 : index
      %37 = memref.load %arg2[%c7] : memref<18xf32, #tpu.memory_space<smem>>
      %c8 = arith.constant 8 : index
      %38 = memref.load %arg2[%c8] : memref<18xf32, #tpu.memory_space<smem>>
      %c9 = arith.constant 9 : index
      %39 = memref.load %arg2[%c9] : memref<18xf32, #tpu.memory_space<smem>>
      %c10 = arith.constant 10 : index
      %40 = memref.load %arg2[%c10] : memref<18xf32, #tpu.memory_space<smem>>
      %c11 = arith.constant 11 : index
      %41 = memref.load %arg2[%c11] : memref<18xf32, #tpu.memory_space<smem>>
      %c12 = arith.constant 12 : index
      %42 = memref.load %arg2[%c12] : memref<18xf32, #tpu.memory_space<smem>>
      %c13 = arith.constant 13 : index
      %43 = memref.load %arg2[%c13] : memref<18xf32, #tpu.memory_space<smem>>
      %c14 = arith.constant 14 : index
      %44 = memref.load %arg2[%c14] : memref<18xf32, #tpu.memory_space<smem>>
      %c15 = arith.constant 15 : index
      %45 = memref.load %arg2[%c15] : memref<18xf32, #tpu.memory_space<smem>>
      %c16 = arith.constant 16 : index
      %46 = memref.load %arg2[%c16] : memref<18xf32, #tpu.memory_space<smem>>
      %c17 = arith.constant 17 : index
      %47 = memref.load %arg2[%c17] : memref<18xf32, #tpu.memory_space<smem>>
      %cst = arith.constant 0.000000e+00 : f32
      %48 = vector.broadcast %cst : f32 to vector<18x18xf32>
      %c0_24 = arith.constant 0 : index
      %c0_25 = arith.constant 0 : index
      %49 = vector.load %arg7[%c0_24, %c0_25] : memref<18x18xf32, #tpu.memory_space<vmem>>, vector<18x18xf32>
      tpu.vector_store %arg7[%c0_24, %c0_25], %48 {strides = array<i32>} : memref<18x18xf32, #tpu.memory_space<vmem>>, vector<18x18xf32>,
      %cst_26 = arith.constant 0.000000e+00 : f32
      %50 = vector.broadcast %cst_26 : f32 to vector<18x18xf32>
      %c0_27 = arith.constant 0 : index
      %c0_28 = arith.constant 0 : index
      %51 = vector.load %arg8[%c0_27, %c0_28] : memref<18x18xf32, #tpu.memory_space<vmem>>, vector<18x18xf32>
      tpu.vector_store %arg8[%c0_27, %c0_28], %50 {strides = array<i32>} : memref<18x18xf32, #tpu.memory_space<vmem>>, vector<18x18xf32>,
      %c0_29 = arith.constant 0 : index
      %c0_30 = arith.constant 0 : index
      %52 = vector.load %arg5[%c0_29, %c0_30] : memref<16x16xf32, #tpu.memory_space<vmem>>, vector<16x16xf32>
      %cst_31 = arith.constant 2.500000e-01 : f32
      %53 = vector.broadcast %cst_31 : f32 to vector<16x16xf32>
      %54 = arith.mulf %52, %53 : vector<16x16xf32>
      %c1_32 = arith.constant 1 : index
      %c1_33 = arith.constant 1 : index
      %55 = vector.load %arg7[%c1_32, %c1_33] : memref<18x18xf32, #tpu.memory_space<vmem>>, vector<16x16xf32>
      tpu.vector_store %arg7[%c1_32, %c1_33], %54 {strides = array<i32>} : memref<18x18xf32, #tpu.memory_space<vmem>>, vector<16x16xf32>,
      %c0_34 = arith.constant 0 : index
      %c0_35 = arith.constant 0 : index
      %56 = vector.load %arg6[%c0_34, %c0_35] : memref<16x16xf32, #tpu.memory_space<vmem>>, vector<16x16xf32>
      %c1_36 = arith.constant 1 : index
      %c1_37 = arith.constant 1 : index
      %57 = vector.load %arg8[%c1_36, %c1_37] : memref<18x18xf32, #tpu.memory_space<vmem>>, vector<16x16xf32>
      tpu.vector_store %arg8[%c1_36, %c1_37], %56 {strides = array<i32>} : memref<18x18xf32, #tpu.memory_space<vmem>>, vector<16x16xf32>,
      %c0_38 = arith.constant 0 : index
      %c0_39 = arith.constant 0 : index
      %58 = vector.load %arg7[%c0_38, %c0_39] : memref<18x18xf32, #tpu.memory_space<vmem>>, vector<18x18xf32>
      %c0_40 = arith.constant 0 : index
      %c0_41 = arith.constant 0 : index
      %59 = vector.load %arg8[%c0_40, %c0_41] : memref<18x18xf32, #tpu.memory_space<vmem>>, vector<18x18xf32>
      %60 = vector.extract_strided_slice %58 {offsets = [0, 0], sizes = [18, 16], strides = [1, 1]} : vector<18x18xf32> to vector<18x16xf32>
      %61 = vector.extract_strided_slice %59 {offsets = [0, 0], sizes = [18, 16], strides = [1, 1]} : vector<18x18xf32> to vector<18x16xf32>
      %62 = vector.broadcast %30 : f32 to vector<18x16xf32>
      %63 = arith.mulf %62, %60 : vector<18x16xf32>
      %64 = vector.broadcast %39 : f32 to vector<18x16xf32>
      %65 = arith.mulf %64, %61 : vector<18x16xf32>
      %66 = arith.addf %63, %65 : vector<18x16xf32>
      %67 = vector.extract_strided_slice %66 {offsets = [0, 0], sizes = [16, 16], strides = [1, 1]} : vector<18x16xf32> to vector<16x16xf32>
      %68 = vector.broadcast %33 : f32 to vector<18x16xf32>
      %69 = arith.mulf %68, %60 : vector<18x16xf32>
      %70 = vector.broadcast %42 : f32 to vector<18x16xf32>
      %71 = arith.mulf %70, %61 : vector<18x16xf32>
      %72 = arith.addf %69, %71 : vector<18x16xf32>
      %73 = vector.extract_strided_slice %72 {offsets = [1, 0], sizes = [16, 16], strides = [1, 1]} : vector<18x16xf32> to vector<16x16xf32>
      %74 = arith.addf %67, %73 : vector<16x16xf32>
      %75 = vector.broadcast %36 : f32 to vector<18x16xf32>
      %76 = arith.mulf %75, %60 : vector<18x16xf32>
      %77 = vector.broadcast %45 : f32 to vector<18x16xf32>
      %78 = arith.mulf %77, %61 : vector<18x16xf32>
      %79 = arith.addf %76, %78 : vector<18x16xf32>
      %80 = vector.extract_strided_slice %79 {offsets = [2, 0], sizes = [16, 16], strides = [1, 1]} : vector<18x16xf32> to vector<16x16xf32>
      %81 = arith.addf %74, %80 : vector<16x16xf32>
      %82 = vector.extract_strided_slice %58 {offsets = [0, 1], sizes = [18, 16], strides = [1, 1]} : vector<18x18xf32> to vector<18x16xf32>
      %83 = vector.extract_strided_slice %59 {offsets = [0, 1], sizes = [18, 16], strides = [1, 1]} : vector<18x18xf32> to vector<18x16xf32>
      %84 = vector.broadcast %31 : f32 to vector<18x16xf32>
      %85 = arith.mulf %84, %82 : vector<18x16xf32>
      %86 = vector.broadcast %40 : f32 to vector<18x16xf32>
      %87 = arith.mulf %86, %83 : vector<18x16xf32>
      %88 = arith.addf %85, %87 : vector<18x16xf32>
      %89 = vector.extract_strided_slice %88 {offsets = [0, 0], sizes = [16, 16], strides = [1, 1]} : vector<18x16xf32> to vector<16x16xf32>
      %90 = vector.broadcast %34 : f32 to vector<18x16xf32>
      %91 = arith.mulf %90, %82 : vector<18x16xf32>
      %92 = vector.broadcast %43 : f32 to vector<18x16xf32>
      %93 = arith.mulf %92, %83 : vector<18x16xf32>
      %94 = arith.addf %91, %93 : vector<18x16xf32>
      %95 = vector.extract_strided_slice %94 {offsets = [1, 0], sizes = [16, 16], strides = [1, 1]} : vector<18x16xf32> to vector<16x16xf32>
      %96 = arith.addf %89, %95 : vector<16x16xf32>
      %97 = vector.broadcast %37 : f32 to vector<18x16xf32>
      %98 = arith.mulf %97, %82 : vector<18x16xf32>
      %99 = vector.broadcast %46 : f32 to vector<18x16xf32>
      %100 = arith.mulf %99, %83 : vector<18x16xf32>
      %101 = arith.addf %98, %100 : vector<18x16xf32>
      %102 = vector.extract_strided_slice %101 {offsets = [2, 0], sizes = [16, 16], strides = [1, 1]} : vector<18x16xf32> to vector<16x16xf32>
      %103 = arith.addf %96, %102 : vector<16x16xf32>
      %104 = vector.extract_strided_slice %58 {offsets = [0, 2], sizes = [18, 16], strides = [1, 1]} : vector<18x18xf32> to vector<18x16xf32>
      %105 = vector.extract_strided_slice %59 {offsets = [0, 2], sizes = [18, 16], strides = [1, 1]} : vector<18x18xf32> to vector<18x16xf32>
      %106 = vector.broadcast %32 : f32 to vector<18x16xf32>
      %107 = arith.mulf %106, %104 : vector<18x16xf32>
      %108 = vector.broadcast %41 : f32 to vector<18x16xf32>
      %109 = arith.mulf %108, %105 : vector<18x16xf32>
      %110 = arith.addf %107, %109 : vector<18x16xf32>
      %111 = vector.extract_strided_slice %110 {offsets = [0, 0], sizes = [16, 16], strides = [1, 1]} : vector<18x16xf32> to vector<16x16xf32>
      %112 = vector.broadcast %35 : f32 to vector<18x16xf32>
      %113 = arith.mulf %112, %104 : vector<18x16xf32>
      %114 = vector.broadcast %44 : f32 to vector<18x16xf32>
      %115 = arith.mulf %114, %105 : vector<18x16xf32>
      %116 = arith.addf %113, %115 : vector<18x16xf32>
      %117 = vector.extract_strided_slice %116 {offsets = [1, 0], sizes = [16, 16], strides = [1, 1]} : vector<18x16xf32> to vector<16x16xf32>
      %118 = arith.addf %111, %117 : vector<16x16xf32>
      %119 = vector.broadcast %38 : f32 to vector<18x16xf32>
      %120 = arith.mulf %119, %104 : vector<18x16xf32>
      %121 = vector.broadcast %47 : f32 to vector<18x16xf32>
      %122 = arith.mulf %121, %105 : vector<18x16xf32>
      %123 = arith.addf %120, %122 : vector<18x16xf32>
      %124 = vector.extract_strided_slice %123 {offsets = [2, 0], sizes = [16, 16], strides = [1, 1]} : vector<18x16xf32> to vector<16x16xf32>
      %125 = arith.addf %118, %124 : vector<16x16xf32>
      %126 = arith.addf %81, %103 : vector<16x16xf32>
      %127 = arith.addf %126, %125 : vector<16x16xf32>
      %128 = arith.negf %127 : vector<16x16xf32>
      %129 = math.exp %128 : vector<16x16xf32>
      %cst_42 = arith.constant 1.000000e+00 : f32
      %130 = vector.broadcast %cst_42 : f32 to vector<16x16xf32>
      %131 = arith.addf %130, %129 : vector<16x16xf32>
      %132 = arith.divf %130, %131 : vector<16x16xf32>
      %c0_43 = arith.constant 0 : index
      %c0_44 = arith.constant 0 : index
      %c0_45 = arith.constant 0 : index
      %c0_46 = arith.constant 0 : index
      %133 = vector.load %arg4[%c0_43, %c0_44, %c0_45, %c0_46] : memref<1x1x16x16xf32, #tpu.memory_space<vmem>>, vector<1x1x16x16xf32>
      %134 = vector.shape_cast %133 : vector<1x1x16x16xf32> to vector<16x16xf32>
      %135 = vector.shape_cast %132 : vector<16x16xf32> to vector<1x1x16x16xf32>
      tpu.vector_store %arg4[%c0_43, %c0_44, %c0_45, %c0_46], %135 {strides = array<i32>} : memref<1x1x16x16xf32, #tpu.memory_space<vmem>>, vector<1x1x16x16xf32>,
    } else {
    }
    return
  }
  func.func @transform_0(%arg0: i32, %arg1: i32) -> i32 {
    %c0_i32 = arith.constant 0 : i32
    %c0_i32_0 = arith.constant 0 : i32
    return %c0_i32 : i32
  }
  func.func @transform_1(%arg0: i32, %arg1: i32) -> (i32, i32, i32, i32) {
    %c0_i32 = arith.constant 0 : i32
    %c0_i32_0 = arith.constant 0 : i32
    %c0_i32_1 = arith.constant 0 : i32
    return %arg0, %arg1, %c0_i32, %c0_i32_0 : i32, i32, i32, i32
  }
  func.func @transform_2(%arg0: i32, %arg1: i32) -> (i32, i32, i32, i32) {
    %c0_i32 = arith.constant 0 : i32
    %c0_i32_0 = arith.constant 0 : i32
    %c0_i32_1 = arith.constant 0 : i32
    %c0_i32_2 = arith.constant 0 : i32
    return %arg0, %c0_i32, %c0_i32_0, %c0_i32_1 : i32, i32, i32, i32
  }
}

</mosaic_0001>

<bundles_post_ra>
// kernel: tpu_custom_call.1
= control target key start
LH: loop header
LB: loop body
LE: loop exit
PB: predicated region body
PF: predicated region fallthrough
CT: control target
= control target key end

     0   :  { %s1269_s0 = inlined_call_operand.hbm [shape: f32[18], index: 0, kind: input, shape index: {}]   ;;  %s1270_s1 = inlined_call_operand.hbm [shape: f32[2,4,16,16], index: 1, kind: input, shape index: {}]   ;;  %s1271_s2 = inlined_call_operand.hbm [shape: f32[2,1,16,16], index: 2, kind: output, shape index: {}]  }
   0x1   :  { %1276 = sst [smem:[#allocation15_spill]] %s1269_s0 }
   0x2   :  { %7 = vsyncpa [#allocation9], 0 }
   0x3   :  { %8 = vsyncpa [#allocation7], 0 }
   0x4   :  { %10 = vsyncpa [#allocation7 + $0x1], 0 }
   0x5   :  { %11 = vsyncpa [#allocation8], 0 }
   0x6   :  { %13 = vsyncpa [#allocation8 + $0x1], 0  ;;  %s899_s9 = smov 0   ;;  %s901_s10 = smov 0  }
   0x7   :  { %s903_s11 = smov 0   ;;  %s905_s12 = smov 0  }
   0x8   :  { %s907_s13 = smov 0   ;;  %s909_s14 = smov 0  }
   0x9 LB: > { %s607_s15 = sadd.s32 4294967295, %s870_s14   ;;  %s608_s16 = sadd.s32 4294967294, %s870_s14   ;;  %s870_s14 = sphi %s909_s14, %s19_s14   ;;  %s866_s13 = sphi %s907_s13, %s1293_s13   ;;  %s862_s12 = sphi %s905_s12, %s1292_s12   ;;  %s858_s11 = sphi %s903_s11, %s1291_s11   ;;  %s854_s10 = sphi %s901_s10, %s1290_s10   ;;  %s850_s9 = sphi %s899_s9, %s1289_s9  }
   0xa   : > { %s61_s17 = sadd.s32 1, %s858_s11  ;;  %p68_p0 = scmp.ne.s32.totalorder %s858_s11, %s854_s10 }
   0xb   : > { %p69_p1 = scmp.eq.s32.totalorder %s870_s14, 0  ;;  %p74_p2 = scmp.ne.s32.totalorder %s854_s10, %s850_s9 }
   0xc   : > { %p937_p3 = scmp.eq.s32.totalorder %s607_s15, 0  ;;  %p98_p4 = scmp.eq.s32.totalorder %s607_s15, 1 }
   0xd   : > { %p70_p5 = por %p69_p1, %p68_p0  ;;  %p104_p6 = scmp.eq.s32.totalorder %s608_s16, 1 }
   0xe   : > { %s1277_s18 = scalar_select %p937_p3, 1, 0 }
   0xf   : > { %p943_p7 = por %p937_p3, %p74_p2  ;;  %p947_p8 = por %p98_p4, %p68_p0 }
  0x10   : > { %p951_p9 = por %p104_p6, %p74_p2  ;;  %p609_p10 = scmp.ge.s32.totalorder %s870_s14, 1 }
  0x11   : > { %s1278_s19 = scalar_select %p943_p7, 1, 0 }
  0x12   : > { %s1279_s20 = scalar_select %p947_p8, 1, 0 }
  0x13   : > { %s1280_s21 = scalar_select %p951_p9, 1, 0 }
  0x14   : > { %p111_p11 = scmp.lt.s32.totalorder %s870_s14, 3  ;;  %p672_p1 = scmp.lt.s32.totalorder %s870_s14, 2 }
  0x15   : > { %s133_s23 = sand.u32 1, %s858_s11   ;;  %s31_s25 = sadd.s32 1, %s866_s13 }
  0x16   : > { %p958_p13 = pnand %p609_p10, %p111_p11  ;;  %p966_p0 = pnand %p672_p1, %p70_p5 }
  0x17   : > { %s612_s26 = sshll.u32 %s133_s23, 6  ;;  %p33_p4 = scmp.ge.s32.totalorder %s31_s25, 2 }
  0x18   : > { %p659_p7 = pneg %p958_p13  ;;  %s1283_s0 = sld [smem:[#allocation15_spill]] }
  0x1a   : > { %p660_p2 = pnand %p659_p7, %p937_p3 }
  0x1c   : > { %p743_p10 = pneg %p660_p2 }
  0x1e   : > { %s741_s29 = scalar_lea.hbm %s1283_s0, 16 }
  0x1f   : > { %p742_p6 = scmp.ne.s32.totalorder %s1283_s0, %s741_s29  ;;  %p748_p5 = scmp.lt.u32.totalorder %s741_s29, %s1283_s0 }
  0x21   : > { %p744_p11 = pnand %p743_p10, %p742_p6 }
  0x23   : > { %p745_p12 = pneg %p744_p11 }
  0x25   : > { %p750_p1 = pnand %p748_p5, %p745_p12 }
  0x27   : > { %753 = shalt.err (!%p750_p1)
}
  0x28   : > { %s872_s6 = smov [#allocation6]   ;;  %s1295_s25 = smov (%p33_p4, %s31_s25), 0 }
  0x29   : > { %662 = dma.hbm_to_smem (!%p660_p2), %s1283_s0, 16, %s872_s6, [#allocation9]  }
  0x2a   : > { %s649_s15 = sshll.u32 %s866_s13, 10  ;;  %s56_s16 = ssub.s32 %s866_s13, %s1295_s25 }
  0x2b   : > { %s993_s29 = scalar_lea.hbm %s1270_s1, %s649_s15  ;;  %p59_p7 = scmp.eq.s32.totalorder %s56_s16, 0 }
  0x2c   : > { %s137_s30 = scalar_lea.vmem [#allocation10], %s612_s26  ;;  %s1002_s5 = scalar_lea.sflag [#allocation7], %s133_s23 }
  0x2d   : > { %s147_s3 = sshll.u32 %s137_s30, 4  ;;  %s754_s6 = scalar_lea.hbm %s993_s29, 1024  ;;  %s995_s3 = int_to_ptr.vmem [resolvable:$true] %s147_s3 }
  0x2e   : > { %s1000_s4 = scalar_select %p59_p7, %s858_s11, %s61_s17  }
  0x2f   : > { %p755_p12 = scmp.ne.s32.totalorder %s993_s29, %s754_s6  ;;  %p756_p2 = pneg %p966_p0 }
  0x30   : > { %s759_s26 = scalar_lea.hbm %s1270_s1, 2048  ;;  %p760_p10 = scmp.lt.u32.totalorder %s993_s29, %s1270_s1 }
  0x31   : > { %p757_p4 = pnand %p756_p2, %p755_p12  ;;  %p761_p11 = scmp.lt.u32.totalorder %s759_s26, %s754_s6 }
  0x32   : > { %p763_p1 = scmp.lt.u32.totalorder %s754_s6, %s993_s29 }
  0x33   : > { %p758_p6 = pneg %p757_p4  ;;  %p762_p5 = por %p761_p11, %p760_p10 }
  0x35   : > { %p764_p7 = por %p763_p1, %p762_p5 }
  0x37   : > { %p765_p9 = pnand %p764_p7, %p758_p6 }
  0x39   : > { %768 = shalt.err (!%p765_p9)
}
  0x3a   : > { %s769_s17 = scalar_lea.vmem %s995_s3, 1024  ;;  %s873_s23 = smov [#allocation10]  }
  0x3b   : > { %p770_p12 = scmp.ne.s32.totalorder %s995_s3, %s769_s17  ;;  %s774_s27 = sshll.u32 %s873_s23, 4  ;;  %s775_s27 = int_to_ptr.vmem [resolvable:$false] %s774_s27 }
  0x3c   : > { %s776_s28 = scalar_lea.vmem %s775_s27, 2048  ;;  %p777_p3 = scmp.lt.s32.totalorder %s995_s3, %s775_s27 }
  0x3d   : > { %p772_p4 = pnand %p770_p12, %p756_p2  ;;  %p778_p10 = scmp.lt.s32.totalorder %s776_s28, %s769_s17 }
  0x3f   : > { %p773_p8 = pneg %p772_p4  ;;  %p779_p11 = por %p778_p10, %p777_p3 }
  0x41   : > { %p780_p5 = pnand %p779_p11, %p773_p8 }
  0x43   : > { %783 = shalt.err (!%p780_p5)
}
  0x44   : > { %s874_s30 = smov 128   ;;  %s875_s6 = smov 8  }
  0x45   : > { %666 = dma.hbm_to_vmem [thread:$0]  (!%p966_p0), %s993_s29, 1024, %s995_s3, %s1002_s5, %s874_s30, %s874_s30, %s875_s6  }
  0x46   : > { %159 = sbr.rel (%p958_p13) target bundleno = 417 (0x1a1), region = 28  ;;  %p1284_p9 = scmp.ne.s32.totalorder (!%p958_p13), %s1277_s18, 0 }
  0x4d   : > { %837 = dma.done.wait (%p1284_p9), [#allocation9], 16  }
  0x4e   : > { %839 = vsyncadd (%p1284_p9), [#allocation9], 4294967280  ;;  %s1037_s7 = sand.u32 1, %s854_s10   ;;  %p1285_p3 = scmp.ne.s32.totalorder %s1278_s19, 0 }
  0x4f   : > { %s617_s8 = sshll.u32 %s1037_s7, 6  ;;  %s166_s26 = scalar_lea.sflag [#allocation7], %s1037_s7 }
  0x50   : > { %s1041_s15 = scalar_lea.vmem [#allocation10], %s617_s8 }
  0x51   : > { %841 = dma.done.wait (%p1285_p3), %s166_s26, 1024  }
  0x52   : > { %843 = vsyncadd (%p1285_p3), %s166_s26, 4294966272 }
  0x53   : > { %174 = sfence }
  0x54   : > { %vm196_vm0 = vcmask 130048   ;;  %v876_v0 = vmov -inf   ;;  %vm258_vm1 = vcmask 146432   ;;  %v877_v1 = vmov 0.0   ;;  %v205_v2 = vld [vmem:[%s1041_s15] sm:$0xff]  ;;  %v206_v3 = vld [vmem:[%s1041_s15 + $0x8] sm:$0xff] }
  0x55   : > { %199 = vst.msk [vmem:[#allocation3] sm:$0xff] %vm196_vm0, %v876_v0  ;;  %200 = vst.msk [vmem:[#allocation3 + $0x8] sm:$0xff] %vm196_vm0, %v876_v0  ;;  %v619_v4 = vld [vmem:[%s1041_s15 + $0x10] sm:$0xff]  ;;  %v620_v7 = vld [vmem:[%s1041_s15 + $0x18] sm:$0xff]  ;;  %vm261_vm2 = vcmask 140288   ;;  %s878_s18 = smov 1  }
  0x56   : > { %197 = vst.msk [vmem:[#allocation2] sm:$0xff] %vm196_vm0, %v877_v1  ;;  %198 = vst.msk [vmem:[#allocation2 + $0x8] sm:$0xff] %vm196_vm0, %v877_v1  ;;  %v621_v12 = vld [vmem:[%s1041_s15 + $0x20] sm:$0xff]  ;;  %v622_v14 = vld [vmem:[%s1041_s15 + $0x28] sm:$0xff]  ;;  %s1063_s19 = sld [smem:[#allocation6 + $0x1]]  ;;  %s628_s22 = sld [smem:[#allocation6 + $0x4]] }
  0x57   : > { %263 = vst.msk [vmem:[#allocation5] sm:$0xff] %vm258_vm1, %v877_v1  ;;  %264 = vst.msk [vmem:[#allocation5 + $0x8] sm:$0xff] %vm258_vm1, %v877_v1  ;;  %v623_v18 = vld [vmem:[%s1041_s15 + $0x30] sm:$0xff]  ;;  %v624_v20 = vld [vmem:[%s1041_s15 + $0x38] sm:$0xff]  ;;  %s631_s24 = sld [smem:[#allocation6 + $0x7]]  ;;  %s1065_s29 = sld [smem:[#allocation6 + $0xa]] }
  0x58   : > { %259 = vst.msk [vmem:[#allocation4] sm:$0xff] %vm258_vm1, %v877_v1  ;;  %260 = vst.msk [vmem:[#allocation4 + $0x8] sm:$0xff] %vm258_vm1, %v877_v1  ;;  %s637_s3 = sld [smem:[#allocation6 + $0xd]]  ;;  %s640_s5 = sld [smem:[#allocation6 + $0x10]]  ;;  %vm278_vm3 = vcmask 138248   ;;  %vm321_vm4 = vcmask 1046528  }
  0x59   : > { %265 = vst.msk [vmem:[#allocation5 + $0x10] sm:$0x3] %vm261_vm2, %v877_v1  ;;  %262 = vst.msk [vmem:[#allocation4 + $0x10] sm:$0x3] %vm261_vm2, %v877_v1  ;;  %s1067_s16 = sld [smem:[#allocation6 + $0x2]]  ;;  %s629_s17 = sld [smem:[#allocation6 + $0x5]] }
  0x5a   : > { %s632_s23 = sld [smem:[#allocation6 + $0x8]]  ;;  %s1069_s27 = sld [smem:[#allocation6 + $0xb]]  ;;  %vm345_vm5 = vcmask 1045504  }
  0x5b   : > { %s638_s28 = sld [smem:[#allocation6 + $0xe]]  ;;  %s641_s30 = sld [smem:[#allocation6 + $0x11]] }
  0x5c   : > { %v203_v5 = vld [vmem:[#allocation3] sm:$0xff]  ;;  %v204_v6 = vld [vmem:[#allocation3 + $0x8] sm:$0xff]  ;;  %s1071_s6 = sld [smem:[#allocation6]]  ;;  %s1073_s8 = sld [smem:[#allocation6 + $0x9]]  ;;  %v355_v39 = vstv %s1063_s19  ;;  %v363_v41 = vstv %s628_s22 }
  0x5d   : > { %v209_v8 = vmax.f32 %v203_v5, %v205_v2  ;;  %v201_v9 = vld [vmem:[#allocation2] sm:$0xff]  ;;  %v210_v10 = vmax.f32 %v204_v6, %v206_v3  ;;  %v202_v11 = vld [vmem:[#allocation2 + $0x8] sm:$0xff]  ;;  %s636_s26 = sld [smem:[#allocation6 + $0xc]]  ;;  %s639_s15 = sld [smem:[#allocation6 + $0xf]]  ;;  %v358_v40 = vstv %s1065_s29  ;;  %v386_v43 = vstv %s631_s24 }
  0x5e   : > { %v207_v13 = vadd.f32 %v205_v2, %v201_v9  ;;  %v208_v15 = vadd.f32 %v206_v3, %v202_v11  ;;  %s630_s0 = sld [smem:[#allocation6 + $0x6]]  ;;  %v367_v42 = vstv %s637_s3  ;;  %v390_v44 = vstv %s640_s5  ;;  %s880_s19 = smov 126  }
  0x5f   : > { %v216_v16 = vmax.f32 %v209_v8, %v619_v4  ;;  %v217_v17 = vmax.f32 %v210_v10, %v620_v7  ;;  %v409_v45 = vstv %s1067_s16  ;;  %v1082_v48 = vstv %s629_s17  ;;  %s618_s22 = sshll.u32 %s1037_s7, 4  ;;  %s650_s24 = sshll.u32 %s862_s12, 8 }
  0x60   : > { %v214_v19 = vadd.f32 %v619_v4, %v207_v13  ;;  %v215_v21 = vadd.f32 %v620_v7, %v208_v15  ;;  %v412_v47 = vstv %s1069_s27  ;;  %v1086_v50 = vstv %s632_s23  ;;  %s190_s29 = scalar_lea.vmem [#allocation11], %s618_s22  ;;  %s1217_s17 = scalar_lea.hbm %s1271_s2, %s650_s24 }
  0x61   : > { %v223_v22 = vmax.f32 %v216_v16, %v621_v12  ;;  %v224_v23 = vmax.f32 %v217_v17, %v622_v14  ;;  %v1084_v49 = vstv %s638_s28  ;;  %v1089_v52 = vstv %s641_s30  ;;  %s511_s3 = sshll.u32 %s190_s29, 4  ;;  %s498_s23 = scalar_lea.sflag [#allocation8], %s1037_s7  ;;  %s1219_s3 = int_to_ptr.vmem [resolvable:$true] %s511_s3 }
  0x62   : > { %v221_v24 = vadd.f32 %v621_v12, %v214_v19  ;;  %v222_v25 = vadd.f32 %v622_v14, %v215_v21  ;;  %v302_v53 = vstv %s1073_s8  ;;  %v299_v57 = vstv %s1071_s6  ;;  %s784_s27 = scalar_lea.vmem %s1219_s3, 256  ;;  %p1286_p13 = scmp.ne.s32.totalorder %s1279_s20, 0 }
  0x63   : > { %v230_v26 = vmax.f32 %v223_v22, %v623_v18  ;;  %v231_v27 = vmax.f32 %v224_v23, %v624_v20  ;;  %v1092_v54 = vstv %s636_s26  ;;  %v1094_v55 = vstv %s639_s15  ;;  %p785_p8 = scmp.ne.s32.totalorder %s1219_s3, %s784_s27  ;;  %s881_s12 = smov [#allocation11]  }
  0x64   : > { %v228_v28 = vadd.f32 %v623_v18, %v221_v24  ;;  %v229_v29 = vadd.f32 %v624_v20, %v222_v25  ;;  %v1099_v59 = vstv %s630_s0  ;;  %s879_s0 = smov 127   ;;  %s788_s28 = sshll.u32 %s881_s12, 4  ;;  %s789_s28 = int_to_ptr.vmem [resolvable:$false] %s788_s28 }
  0x65   : > { %235 = vst.msk [vmem:[#allocation3] sm:$0xff] %vm196_vm0, %v230_v26  ;;  %236 = vst.msk [vmem:[#allocation3 + $0x8] sm:$0xff] %vm196_vm0, %v231_v27  ;;  %p786_p0 = pnand %p785_p8, %p1286_p13  ;;  %s790_s30 = scalar_lea.vmem %s789_s28, 512 }
  0x66   : > { %233 = vst.msk [vmem:[#allocation2] sm:$0xff] %vm196_vm0, %v228_v28  ;;  %234 = vst.msk [vmem:[#allocation2 + $0x8] sm:$0xff] %vm196_vm0, %v229_v29  ;;  %p791_p6 = scmp.lt.s32.totalorder %s1219_s3, %s789_s28  ;;  %p792_p1 = scmp.lt.s32.totalorder %s790_s30, %s784_s27 }
  0x67   : > { %p787_p2 = pneg %p786_p0 }
  0x68   : > { %p793_p7 = por %p792_p1, %p791_p6 }
  0x6a   : > { %p794_p12 = pnand %p793_p7, %p787_p2 }
  0x6c   : > { %v281_v30 = vld [vmem:[#allocation3] sm:$0xff]  ;;  %v282_v34 = vld [vmem:[#allocation3 + $0x8] sm:$0xff] }
  0x6d   : > { %285 = vrot.lane.b32.xlu1 %v281_v30, %s878_s18  ;;  %v266_v31 = vld [vmem:[#allocation2] sm:$0xff]  ;;  %v267_v32 = vld [vmem:[#allocation2 + $0x8] sm:$0xff] }
  0x6e   : > { %v268_v33 = vmul.f32 0.25, %v266_v31  ;;  %v269_v35 = vmul.f32 0.25, %v267_v32 }
  0x70   : > { %272 = vrot.lane.b32.xlu0 %v268_v33, %s878_s18 }
  0x71   : > { %287 = vrot.lane.b32.xlu1 %v282_v34, %s878_s18 }
  0x74   : > { %274 = vrot.lane.b32.xlu0 %v269_v35, %s878_s18  ;;  %s627_s18 = sld [smem:[#allocation6 + $0x3]] }
  0x7a   : > { %v1097_v58 = vstv %s627_s18 }
  0xdf   : > { %v286_v36 = vpop.permute.xlu1 %285 }
  0xe0   : > { %291 = vst.msk [vmem:[#allocation5 + $0x1] sm:$0xff] %vm278_vm3, %v286_v36 }
  0xe2   : > { %v273_v37 = vpop.permute.xlu0 %272 }
  0xe3   : > { %279 = vst.msk [vmem:[#allocation4 + $0x1] sm:$0xff] %vm278_vm3, %v273_v37  ;;  %v288_v38 = vpop.permute.xlu1 %287 }
  0xe4   : > { %292 = vst.msk [vmem:[#allocation5 + $0x9] sm:$0xff] %vm278_vm3, %v288_v38 }
  0xe6   : > { %v275_v46 = vpop.permute.xlu0 %274 }
  0xe7   : > { %280 = vst.msk [vmem:[#allocation4 + $0x9] sm:$0xff] %vm278_vm3, %v275_v46  ;;  %v296_v51 = vld [vmem:[#allocation5] sm:$0xff] }
  0xe8   : > { %v359_v56 = vmul.f32 %v358_v40, %v296_v51  ;;  %v368_v60 = vmul.f32 %v367_v42, %v296_v51  ;;  %v391_v61 = vmul.f32 %v390_v44, %v296_v51  ;;  %v413_v62 = vmul.f32 %v412_v47, %v296_v51 }
  0xe9   : > { %v422_v63 = vmul.f32 %v1084_v49, %v296_v51  ;;  %v445_v1 = vmul.f32 %v1089_v52, %v296_v51  ;;  %v1109_v2 = vmul.f32 %v302_v53, %v296_v51  ;;  %v1112_v3 = vmul.f32 %v1092_v54, %v296_v51 }
  0xea   : > { %v1104_v0 = vld [vmem:[#allocation4] sm:$0xff]  ;;  %v1115_v4 = vmul.f32 %v1094_v55, %v296_v51 }
  0xeb   : > { %v1117_v5 = vld [vmem:[#allocation5 + $0x8] sm:$0xff]  ;;  %v356_v6 = vmul.f32 %v355_v39, %v1104_v0  ;;  %v364_v7 = vmul.f32 %v363_v41, %v1104_v0  ;;  %v387_v8 = vmul.f32 %v386_v43, %v1104_v0  ;;  %v1122_v9 = vld [vmem:[#allocation5 + $0x10] sm:$0x3]  ;;  %v410_v10 = vmul.f32 %v409_v45, %v1104_v0 }
  0xec   : > { %v369_v11 = vmul.f32 %v367_v42, %v1117_v5  ;;  %v392_v12 = vmul.f32 %v390_v44, %v1117_v5  ;;  %v360_v13 = vmul.f32 %v358_v40, %v1117_v5  ;;  %v370_v14 = vmul.f32 %v367_v42, %v1122_v9 }
  0xed   : > { %v361_v15 = vadd.f32 %v359_v56, %v356_v6  ;;  %v371_v16 = vadd.f32 %v368_v60, %v364_v7  ;;  %v394_v17 = vadd.f32 %v391_v61, %v387_v8  ;;  %v393_v18 = vmul.f32 %v390_v44, %v1122_v9 }
  0xee   : > { %v1132_v19 = vld [vmem:[#allocation4 + $0x8] sm:$0xff]  ;;  %v1134_v20 = vld [vmem:[#allocation4 + $0x10] sm:$0x3]  ;;  %v415_v21 = vadd.f32 %v413_v62, %v410_v10  ;;  %v418_v22 = vmul.f32 %v1082_v48, %v1104_v0  ;;  %v423_v23 = vmul.f32 %v1084_v49, %v1117_v5  ;;  %v441_v24 = vmul.f32 %v1086_v50, %v1104_v0 }
  0xef   : > { %v365_v25 = vmul.f32 %v363_v41, %v1132_v19  ;;  %v377_v26 = vrot.slane %v371_v16, 1  ;;  %v388_v27 = vmul.f32 %v386_v43, %v1132_v19  ;;  %v400_v28 = vrot.slane %v394_v17, 2 }
  0xf0   : > { %v357_v29 = vmul.f32 %v355_v39, %v1132_v19  ;;  %v366_v30 = vmul.f32 %v363_v41, %v1134_v20  ;;  %v389_v31 = vmul.f32 %v386_v43, %v1134_v20  ;;  %v419_v32 = vmul.f32 %v1082_v48, %v1132_v19 }
  0xf1   : > { %v372_v33 = vadd.f32 %v369_v11, %v365_v25  ;;  %v395_v34 = vadd.f32 %v392_v12, %v388_v27  ;;  %v425_v35 = vadd.f32 %v422_v63, %v418_v22  ;;  %v442_v36 = vmul.f32 %v1086_v50, %v1132_v19 }
  0xf2   : > { %v362_v37 = vadd.f32 %v360_v13, %v357_v29  ;;  %v373_v38 = vadd.f32 %v370_v14, %v366_v30  ;;  %v396_v40 = vadd.f32 %v393_v18, %v389_v31  ;;  %v426_v42 = vadd.f32 %v423_v23, %v419_v32 }
  0xf3   : > { %v378_v44 = vrot.slane %v372_v33, 1  ;;  %v401_v39 = vrot.slane %v395_v34, 2  ;;  %v431_v46 = vrot.slane %v425_v35, 1  ;;  %v446_v41 = vmul.f32 %v1089_v52, %v1117_v5 }
  0xf4   : > { %v380_v43 = vrot.slane %v373_v38, 1  ;;  %v403_v51 = vrot.slane %v396_v40, 2  ;;  %v432_v56 = vrot.slane %v426_v42, 1  ;;  %v448_v60 = vadd.f32 %v445_v1, %v441_v24 }
  0xf5   : > { %v379_v61 = vsel %vm321_vm4, %v377_v26, %v378_v44  ;;  %v402_v62 = vsel %vm345_vm5, %v400_v28, %v401_v39  ;;  %v449_v63 = vadd.f32 %v446_v41, %v442_v36  ;;  %v411_v6 = vmul.f32 %v409_v45, %v1132_v19 }
  0xf6   : > { %v384_v7 = vadd.f32 %v379_v61, %v361_v15  ;;  %v381_v8 = vsel %vm321_vm4, %v378_v44, %v380_v43  ;;  %v404_v10 = vsel %vm345_vm5, %v401_v39, %v403_v51  ;;  %v433_v11 = vsel %vm321_vm4, %v431_v46, %v432_v56 }
  0xf7   : > { %v385_v12 = vadd.f32 %v381_v8, %v362_v37  ;;  %v438_v13 = vadd.f32 %v433_v11, %v415_v21  ;;  %v454_v14 = vrot.slane %v448_v60, 2  ;;  %v455_v1 = vrot.slane %v449_v63, 2 }
  0xf8   : > { %v407_v16 = vadd.f32 %v402_v62, %v384_v7  ;;  %v414_v17 = vmul.f32 %v412_v47, %v1117_v5  ;;  %v420_v18 = vmul.f32 %v1082_v48, %v1134_v20  ;;  %v424_v45 = vmul.f32 %v1084_v49, %v1122_v9 }
  0xf9   : > { %v408_v15 = vadd.f32 %v404_v10, %v385_v12  ;;  %v456_v22 = vsel %vm345_vm5, %v454_v14, %v455_v1  ;;  %v443_v23 = vmul.f32 %v1086_v50, %v1134_v20  ;;  %v447_v21 = vmul.f32 %v1089_v52, %v1122_v9 }
  0xfa   : > { %465 = vrot.lane.b32.xlu0 %v407_v16, %s879_s0  ;;  %v461_v24 = vadd.f32 %v456_v22, %v438_v13  ;;  %v427_v25 = vadd.f32 %v424_v45, %v420_v18  ;;  %v300_v47 = vmul.f32 %v299_v57, %v1104_v0  ;;  %v416_v48 = vadd.f32 %v414_v17, %v411_v6 }
  0xfb   : > { %467 = vrot.lane.b32.xlu1 %v408_v15, %s879_s0  ;;  %v450_v26 = vadd.f32 %v447_v21, %v443_v23  ;;  %v308_v49 = vmul.f32 %v1097_v58, %v1104_v0  ;;  %v332_v27 = vmul.f32 %v1099_v59, %v1104_v0  ;;  %v313_v52 = vmul.f32 %v1092_v54, %v1117_v5 }
  0xfc   : > { %v434_v50 = vrot.slane %v427_v25, 1  ;;  %v305_v28 = vadd.f32 %v1109_v2, %v300_v47  ;;  %v309_v29 = vmul.f32 %v1097_v58, %v1132_v19  ;;  %v333_v33 = vmul.f32 %v1099_v59, %v1132_v19 }
  0xfd   : > { %v457_v30 = vrot.slane %v450_v26, 2  ;;  %v315_v31 = vadd.f32 %v1112_v3, %v308_v49  ;;  %v339_v32 = vadd.f32 %v1115_v4, %v332_v27  ;;  %v337_v2 = vmul.f32 %v1094_v55, %v1117_v5 }
  0xfe   : > { %475 = vrot.lane.b32.xlu0 %v461_v24, %s880_s19  ;;  %v435_v0 = vsel %vm321_vm4, %v432_v56, %v434_v50  ;;  %v316_v34 = vadd.f32 %v313_v52, %v309_v29  ;;  %v310_v35 = vmul.f32 %v1097_v58, %v1134_v20  ;;  %v314_v40 = vmul.f32 %v1092_v54, %v1122_v9 }
  0xff   : > { %v439_v36 = vadd.f32 %v435_v0, %v416_v48  ;;  %v458_v3 = vsel %vm345_vm5, %v455_v1, %v457_v30  ;;  %v322_v4 = vrot.slane %v315_v31, 1  ;;  %v340_v38 = vadd.f32 %v337_v2, %v333_v33 }
 0x100   : > { %v323_v37 = vrot.slane %v316_v34, 1  ;;  %v334_v42 = vmul.f32 %v1099_v59, %v1134_v20  ;;  %v304_v39 = vmul.f32 %v302_v53, %v1117_v5  ;;  %v338_v46 = vmul.f32 %v1094_v55, %v1122_v9 }
 0x101   : > { %v462_v44 = vadd.f32 %v458_v3, %v439_v36  ;;  %v301_v58 = vmul.f32 %v299_v57, %v1132_v19  ;;  %v346_v41 = vrot.slane %v339_v32, 2  ;;  %v347_v51 = vrot.slane %v340_v38, 2 }
 0x102   : > { %v324_v43 = vsel %vm321_vm4, %v322_v4, %v323_v37  ;;  %v317_v56 = vadd.f32 %v314_v40, %v310_v35  ;;  %v341_v60 = vadd.f32 %v338_v46, %v334_v42 }
 0x103   : > { %477 = vrot.lane.b32.xlu1 %v462_v44, %s880_s19  ;;  %v329_v54 = vadd.f32 %v324_v43, %v305_v28  ;;  %v306_v61 = vadd.f32 %v304_v39, %v301_v58  ;;  %v348_v59 = vsel %vm345_vm5, %v346_v41, %v347_v51 }
 0x104   : > { %v325_v20 = vrot.slane %v317_v56, 1  ;;  %v349_v53 = vrot.slane %v341_v60, 2 }
 0x105   : > { %v353_v62 = vadd.f32 %v348_v59, %v329_v54 }
 0x106   : > { %v326_v5 = vsel %vm321_vm4, %v323_v37, %v325_v20  ;;  %v350_v9 = vsel %vm345_vm5, %v347_v51, %v349_v53 }
 0x107   : > { %v330_v55 = vadd.f32 %v326_v5, %v306_v61 }
 0x109   : > { %v354_v57 = vadd.f32 %v350_v9, %v330_v55 }
 0x16c   : > { %v466_v19 = vpop.permute.xlu0 %465 }
 0x16d   : > { %v471_v63 = vadd.f32 %v466_v19, %v353_v62  ;;  %v468_v6 = vpop.permute.xlu1 %467 }
 0x16e   : > { %v472_v11 = vadd.f32 %v468_v6, %v354_v57 }
 0x170   : > { %v476_v7 = vpop.permute.xlu0 %475 }
 0x171   : > { %v481_v8 = vadd.f32 %v476_v7, %v471_v63 }
 0x173   : > { %v642_v10 = vmul.f32 -1.442695, %v481_v8 }
 0x175   : > { %733 = vpow2.f32 %v642_v10  ;;  %v478_v12 = vpop.permute.xlu1 %477 }
 0x176   : > { %v482_v13 = vadd.f32 %v478_v12, %v472_v11 }
 0x178   : > { %v643_v14 = vmul.f32 -1.442695, %v482_v13 }
 0x17a   : > { %735 = vpow2.f32 %v643_v14 }
 0x17f   : > { %v734_v1 = vpop.eup %733 }
 0x180   : > { %v489_v16 = vadd.f32 1.0, %v734_v1 }
 0x182   : > { %737 = vrcp.f32 %v489_v16 }
 0x184   : > { %v736_v17 = vpop.eup %735 }
 0x185   : > { %v490_v18 = vadd.f32 1.0, %v736_v17 }
 0x187   : > { %739 = vrcp.f32 %v490_v18 }
 0x18c   : > { %v738_v45 = vpop.eup %737 }
 0x18d   : > { %495 = vst.msk [vmem:[%s190_s29] sm:$0xff] %vm196_vm0, %v738_v45 }
 0x191   : > { %v740_v15 = vpop.eup %739 }
 0x192   : > { %496 = vst.msk [vmem:[%s190_s29 + $0x8] sm:$0xff] %vm196_vm0, %v740_v15 }
 0x193   : > { %797 = shalt.err (!%p794_p12)
}
 0x194   : > { %s798_s6 = scalar_lea.hbm %s1217_s17, 256  ;;  %s802_s15 = scalar_lea.hbm %s1271_s2, 512 }
 0x195   : > { %p799_p4 = scmp.ne.s32.totalorder %s1217_s17, %s798_s6  ;;  %p803_p5 = scmp.lt.u32.totalorder %s1217_s17, %s1271_s2 }
 0x196   : > { %p804_p9 = scmp.lt.u32.totalorder %s802_s15, %s798_s6  ;;  %p806_p8 = scmp.lt.u32.totalorder %s798_s6, %s1217_s17 }
 0x197   : > { %p800_p10 = pnand %p799_p4, %p1286_p13 }
 0x198   : > { %p805_p3 = por %p804_p9, %p803_p5 }
 0x199   : > { %p801_p11 = pneg %p800_p10 }
 0x19a   : > { %p807_p0 = por %p806_p8, %p805_p3 }
 0x19c   : > { %p808_p2 = pnand %p807_p0, %p801_p11 }
 0x19e   : > { %811 = shalt.err (!%p808_p2)
}
 0x19f   : > { %s882_s19 = smov 128   ;;  %s883_s22 = smov 8  }
 0x1a0   : > { %657 = dma.vmem_to_hbm [thread:$0]  (%p1286_p13), %s1219_s3, 256, %s1217_s17, %s498_s23, %s882_s19, %s882_s19, %s883_s22  }
 0x1a1 PF: > { %s526_s24 = sand.u32 1, %s850_s9   ;;  %p1287_p6 = scmp.ne.s32.totalorder %s1280_s21, 0 }
 0x1a2   : > { %p1288_p1 = scmp.ge.s32.totalorder %s870_s14, 2  ;;  %s527_s29 = scalar_lea.sflag [#allocation8], %s526_s24 }
 0x1a4   : > { %p668_p7 = pnand %p1288_p1, %p1287_p6 }
 0x1a6   : > { %845 = dma.done.wait (!%p668_p7), %s527_s29, 256  }
 0x1a7   : > { %847 = vsyncadd (!%p668_p7), %s527_s29, 4294967040  ;;  %s19_s14 = sadd.s32 1, %s870_s14   ;;  %s1289_s9 = smov %s854_s10 }
 0x1a8   : > { %p16_p12 = scmp.ge.s32.totalorder %s19_s14, 4   ;;  %s1290_s10 = smov %s858_s11 }
 0x1a9   : > { %s1291_s11 = smov %s1000_s4  ;;  %s1292_s12 = smov %s866_s13 }
 0x1aa   : > { %s1293_s13 = smov %s1295_s25  ;;  %18 = sbr.rel (!%p16_p12) target bundleno = 9 (0x9), region = 89 }
 0x1b1   :  { %532 = vsyncpa [#allocation7], 1 }
 0x1b2   :  { %534 = vsyncpa [#allocation7 + $0x1], 1 }
 0x1b3   :  { %535 = vsyncpa [#allocation8], 1 }
 0x1b4   :  { %537 = vsyncpa [#allocation8 + $0x1], 1 }
 0x1b5   :  { %538 = vsyncpa [#allocation9], 1 }
 0x1b6   :  { %540 = vsyncpa [#allocation9 + $0x1], 1 }

</bundles_post_ra>
